<compile_context>
chip_gen: v7x
topology: tpu7x:2x2x1
jax: 0.10.0
libtpu: 0.0.40
codegen_flags: <defaults>
</compile_context>

<pallas_src>
import jax
import jax.numpy as jnp
import numpy as np
from jax.experimental import pallas as pl
from jax.experimental.pallas import tpu as pltpu

# --- constants: values of the registered buffers in BicycleModel.__init__ ---
FRONT_WB = -0.090769015
REAR_WB = 1.4178275
STEER_GAIN = 0.36848336
BRAKE_ACCEL = -4.952399
THROT_ACCEL = 0.5633837

_K_BETA = REAR_WB / (FRONT_WB + REAR_WB)
_INV_REAR_WB = 1.0 / REAR_WB

_SUB = 8                 # sublane rows per channel plane
_LANE = 128              # lane quantum
_DEFAULT_LANE_TILE = 8192
_MAX_LANE_TILE = 32768   # keep double-buffered footprint well inside v7x's 64 MiB VMEM

# state slab channels
_S_PX, _S_PY, _S_YAW, _S_VX, _S_VY = range(5)
_N_ST = 5
# action slab channels
_A_ACC, _A_STEER, _A_MASK = range(3)
_N_ACT = 3


# -----------------------------------------------------------------------------------
# shared per-element update (one bicycle-model step on [8, tl] planes)
# -----------------------------------------------------------------------------------
def _advance(dt, px, py, yaw, vx, vy, accel, steer, mask):
    wheel = STEER_GAIN * steer
    w2 = wheel * wheel
    # |wheel| <= STEER_GAIN * |steer| ~= 0.37 rad -> short Taylor polynomials, no range
    # reduction (error << f32 epsilon over that range).
    sin_w = wheel * (1.0 + w2 * (-1.0 / 6.0 + w2 * (1.0 / 120.0 + w2 * (-1.0 / 5040.0))))
    cos_w = 1.0 + w2 * (-0.5 + w2 * (1.0 / 24.0 + w2 * (-1.0 / 720.0)))

    # beta = atan(k * tan(wheel)); only sin/cos(beta) are needed.  Exact identity,
    # no atan, no divide — one rsqrt on the EUP.
    ks = _K_BETA * sin_w
    inv_norm = jax.lax.rsqrt(cos_w * cos_w + ks * ks)
    sin_beta = ks * inv_norm
    cos_beta = cos_w * inv_norm

    speed = jnp.sqrt(vx * vx + vy * vy)

    cos_yaw = jnp.cos(yaw)
    sin_yaw = jnp.sin(yaw)
    mc_x = cos_yaw * cos_beta - sin_yaw * sin_beta   # cos(yaw + beta)
    mc_y = sin_yaw * cos_beta + cos_yaw * sin_beta   # sin(yaw + beta)

    s = speed * (dt * mask)                          # shared factor speed*dt*update_mask
    n_px = px + s * mc_x
    n_py = py + s * mc_y
    n_yaw = yaw + s * sin_beta * _INV_REAR_WB

    # F.softplus(x, beta=7): (1/7)*log1p(exp(7x)); linear above torch threshold 20.
    sp_in = speed + accel * dt
    z = 7.0 * sp_in
    new_speed = jnp.where(z > 20.0, sp_in, jnp.log1p(jnp.exp(z)) * (1.0 / 7.0))

    n_vx = vx + (new_speed * mc_x - vx) * mask
    n_vy = vy + (new_speed * mc_y - vy) * mask
    return n_px, n_py, n_yaw, n_vx, n_vy


# -----------------------------------------------------------------------------------
# kernels
# -----------------------------------------------------------------------------------
def _step_kernel(dt_ref, st_ref, act_ref, out_ref):
    """One step.  st_ref/out_ref: [5, 8, tl], act_ref: [3, 8, tl], dt_ref: [1] SMEM."""
    dt = dt_ref[0]
    n_px, n_py, n_yaw, n_vx, n_vy = _advance(
        dt,
        st_ref[_S_PX], st_ref[_S_PY], st_ref[_S_YAW], st_ref[_S_VX], st_ref[_S_VY],
        act_ref[_A_ACC], act_ref[_A_STEER], act_ref[_A_MASK])
    out_ref[_S_PX] = n_px
    out_ref[_S_PY] = n_py
    out_ref[_S_YAW] = n_yaw
    out_ref[_S_VX] = n_vx
    out_ref[_S_VY] = n_vy


def _rollout_kernel(dt_ref, st0_ref, act_ref, out_ref):
    """Fused T-step rollout.  Grid = (lane_tiles, T); out_ref is VMEM-resident across T.

    st0_ref/out_ref: [5, 8, tl]; act_ref: [1, 3, 8, tl] (this step's actions)."""
    t = pl.program_id(1)

    @pl.when(t == 0)
    def _():
        out_ref[...] = st0_ref[...]

    dt = dt_ref[0]
    act = act_ref[0]                                  # [3, 8, tl]
    n_px, n_py, n_yaw, n_vx, n_vy = _advance(
        dt,
        out_ref[_S_PX], out_ref[_S_PY], out_ref[_S_YAW], out_ref[_S_VX], out_ref[_S_VY],
        act[_A_ACC], act[_A_STEER], act[_A_MASK])
    out_ref[_S_PX] = n_px
    out_ref[_S_PY] = n_py
    out_ref[_S_YAW] = n_yaw
    out_ref[_S_VX] = n_vx
    out_ref[_S_VY] = n_vy


# -----------------------------------------------------------------------------------
# packing helpers (layout plumbing; done once per rollout, not per step)
# -----------------------------------------------------------------------------------
def _lane_geometry(M, lane_tile=_DEFAULT_LANE_TILE):
    """Pick (lane tile, total lanes, grid) for M flattened agents."""
    assert lane_tile % _LANE == 0 and lane_tile > 0
    rows = -(-M // _SUB)                                    # ceil(M / 8) lanes (raw)
    lanes_min = max(_LANE, -(-rows // _LANE) * _LANE)       # round up to 128
    if lanes_min >= 2 * _LANE:
        # Guarantee grid >= 2 so the "parallel" axis shards over both TCs on v7x.
        half = max(_LANE, (lanes_min // (2 * _LANE)) * _LANE)
        tl = min(lane_tile, half, _MAX_LANE_TILE)
    else:
        tl = lanes_min
    lanes = -(-lanes_min // tl) * tl
    return tl, lanes, lanes // tl


def pack_state(state, lanes):
    pos = state['pos'].astype(jnp.float32)
    yaw = state['yaw'].astype(jnp.float32)
    vel = state['vel'].astype(jnp.float32)
    B, N = pos.shape[:2]
    M = B * N
    padded = lanes * _SUB
    planes = jnp.stack([
        pos[..., 0].reshape(M), pos[..., 1].reshape(M),
        yaw[..., 0].reshape(M),
        vel[..., 0].reshape(M), vel[..., 1].reshape(M)], axis=0)
    return jnp.pad(planes, ((0, 0), (0, padded - M))).reshape(_N_ST, _SUB, lanes)


def unpack_state(slab, B, N):
    M = B * N
    flat = slab.reshape(_N_ST, -1)[:, :M]
    pos = jnp.stack([flat[_S_PX].reshape(B, N), flat[_S_PY].reshape(B, N)], axis=-1)
    yaw = flat[_S_YAW].reshape(B, N, 1)
    vel = jnp.stack([flat[_S_VX].reshape(B, N), flat[_S_VY].reshape(B, N)], axis=-1)
    return {'pos': pos, 'yaw': yaw, 'vel': vel}


def pack_actions(actions, is_terminated, lanes, B, N):
    brake = actions['brake'].astype(jnp.float32).reshape(B, N)
    throttle = actions['throttle'].astype(jnp.float32).reshape(B, N)
    steer = actions['steer'].astype(jnp.float32).reshape(B, N)
    # accel precomputed in the (memory-bound) pack instead of in the kernel.
    accel = brake * BRAKE_ACCEL + throttle * jnp.where(
        throttle < 0.0, -BRAKE_ACCEL, THROT_ACCEL)
    mask = jnp.broadcast_to(
        jnp.logical_not(is_terminated).reshape(B, 1), (B, N)).astype(jnp.float32)
    M = B * N
    padded = lanes * _SUB
    planes = jnp.stack([accel.reshape(M), steer.reshape(M), mask.reshape(M)], axis=0)
    # NOTE: padded tail must stay 0 in the mask channel so padded lanes never update.
    return jnp.pad(planes, ((0, 0), (0, padded - M))).reshape(_N_ACT, _SUB, lanes)


# -----------------------------------------------------------------------------------
# public entry points
# -----------------------------------------------------------------------------------
def bicycle_model_step_packed(state_slab, act_slab, delta_t, *, lane_tile):
    """One step on packed slabs; state slab is aliased / updated in place."""
    n_st, sub, lanes = state_slab.shape
    assert (n_st, sub) == (_N_ST, _SUB) and lanes % lane_tile == 0
    tl = lane_tile
    grid = lanes // tl
    dt_arr = jnp.asarray([delta_t], dtype=jnp.float32)
    return pl.pallas_call(
        _step_kernel,
        grid=(grid,),
        in_specs=[
            pl.BlockSpec(memory_space=pltpu.MemorySpace.SMEM),          # delta_t scalar
            pl.BlockSpec((_N_ST, _SUB, tl), lambda i: (0, 0, i)),       # state slab
            pl.BlockSpec((_N_ACT, _SUB, tl), lambda i: (0, 0, i)),      # action slab
        ],
        out_specs=pl.BlockSpec((_N_ST, _SUB, tl), lambda i: (0, 0, i)),
        out_shape=jax.ShapeDtypeStruct((_N_ST, _SUB, lanes), jnp.float32),
        input_output_aliases={1: 0},                                    # in-place state
        compiler_params=pltpu.CompilerParams(
            dimension_semantics=("parallel",),
            vmem_limit_bytes=32 * 1024 * 1024,
        ),
    )(dt_arr, state_slab, act_slab)


def bicycle_model_step(state, actions, is_terminated, delta_t, *,
                       lane_tile=_DEFAULT_LANE_TILE):
    """Drop-in functional equivalent of BicycleModel.forward (single step)."""
    B, N = state['pos'].shape[:2]
    tl, lanes, _ = _lane_geometry(B * N, lane_tile)
    st = pack_state(state, lanes)
    act = pack_actions(actions, is_terminated, lanes, B, N)
    out = bicycle_model_step_packed(st, act, delta_t, lane_tile=tl)
    new_state = dict(state)
    new_state.update(unpack_state(out, B, N))
    return new_state


def bicycle_model_rollout(state, actions_seq, is_terminated_seq, delta_t, *,
                          lane_tile=_DEFAULT_LANE_TILE):
    """Fused T-step rollout.  Equivalent to calling forward() T times sequentially.

    actions_seq: dict of [T, B, N, 1] arrays; is_terminated_seq: [T, B] bool.
    The state lives in VMEM across the time axis; actions are streamed per step.
    """
    B, N = state['pos'].shape[:2]
    T = actions_seq['steer'].shape[0]
    tl, lanes, grid = _lane_geometry(B * N, lane_tile)
    st = pack_state(state, lanes)
    act_seq = jax.vmap(lambda a, term: pack_actions(a, term, lanes, B, N))(
        actions_seq, is_terminated_seq)                       # [T, 3, 8, lanes]
    dt_arr = jnp.asarray([delta_t], dtype=jnp.float32)
    out = pl.pallas_call(
        _rollout_kernel,
        grid=(grid, T),
        in_specs=[
            pl.BlockSpec(memory_space=pltpu.MemorySpace.SMEM),              # delta_t
            pl.BlockSpec((_N_ST, _SUB, tl), lambda i, t: (0, 0, i)),        # initial state
            pl.BlockSpec((1, _N_ACT, _SUB, tl), lambda i, t: (t, 0, 0, i)),  # step-t actions
        ],
        out_specs=pl.BlockSpec((_N_ST, _SUB, tl), lambda i, t: (0, 0, i)),  # VMEM-resident
        out_shape=jax.ShapeDtypeStruct((_N_ST, _SUB, lanes), jnp.float32),
        compiler_params=pltpu.CompilerParams(
            dimension_semantics=("parallel", "arbitrary"),
            vmem_limit_bytes=32 * 1024 * 1024,
        ),
    )(dt_arr, st, act_seq)
    new_state = dict(state)
    new_state.update(unpack_state(out, B, N))
    return new_state


# -----------------------------------------------------------------------------------
# pure-JAX reference (transcription of the PyTorch forward) for correctness checking
# -----------------------------------------------------------------------------------
def _reference(state, actions, is_terminated, delta_t):
    brake, throttle, steer = actions['brake'], actions['throttle'], actions['steer']
    braking_adv = throttle < 0
    accel = (brake * BRAKE_ACCEL
             + braking_adv * (-BRAKE_ACCEL) * throttle
             + (~braking_adv) * THROT_ACCEL * throttle)
    wheel = STEER_GAIN * steer
    beta = jnp.arctan(REAR_WB / (FRONT_WB + REAR_WB) * jnp.tan(wheel))
    speed = jnp.linalg.norm(state['vel'], axis=-1, keepdims=True)
    mc = jnp.concatenate([jnp.cos(state['yaw'] + beta),
                          jnp.sin(state['yaw'] + beta)], axis=-1)
    mask = (~is_terminated).reshape(-1, 1, 1)
    pos = state['pos'] + speed * mc * delta_t * mask
    yaw = state['yaw'] + speed / REAR_WB * jnp.sin(beta) * delta_t * mask
    x = speed + accel * delta_t
    speed = jnp.where(7.0 * x > 20.0, x, jnp.log1p(jnp.exp(7.0 * x)) / 7.0)
    vel = state['vel'] + (speed * mc - state['vel']) * mask
    return {'pos': pos, 'yaw': yaw, 'vel': vel}


if __name__ == "__main__":
    key = jax.random.PRNGKey(0)
    B, N, T = 2, 8, 4
    delta_t = 0.1
    ks = jax.random.split(key, 10)

    state = {
        'pos': jax.random.normal(ks[0], (B, N, 2), jnp.float32) * 10.0,
        'yaw': jax.random.uniform(ks[1], (B, N, 1), jnp.float32, minval=-3.1, maxval=3.1),
        'vel': jax.random.normal(ks[2], (B, N, 2), jnp.float32) * 3.0,
    }
    actions = {
        'brake': (jax.random.uniform(ks[3], (B, N, 1)) > 0.7).astype(jnp.float32),
        'throttle': jax.random.uniform(ks[4], (B, N, 1), jnp.float32, minval=-0.5, maxval=1.0),
        'steer': jax.random.uniform(ks[5], (B, N, 1), jnp.float32, minval=-1.0, maxval=1.0),
    }
    is_terminated = jax.random.uniform(ks[6], (B,)) > 0.5

    # ---- single step ----
    new_state = bicycle_model_step(state, actions, is_terminated, delta_t)
    jax.block_until_ready(new_state)
    ref_state = _reference(state, actions, is_terminated, delta_t)
    for k in ('pos', 'yaw', 'vel'):
        np.testing.assert_allclose(np.asarray(new_state[k]), np.asarray(ref_state[k]),
                                   rtol=1e-5, atol=1e-5)

    # ---- fused T-step rollout (actions known in advance, as in World-On-Rails) ----
    actions_seq = {
        'brake': (jax.random.uniform(ks[7], (T, B, N, 1)) > 0.7).astype(jnp.float32),
        'throttle': jax.random.uniform(ks[8], (T, B, N, 1), jnp.float32, minval=-0.5, maxval=1.0),
        'steer': jax.random.uniform(ks[9], (T, B, N, 1), jnp.float32, minval=-1.0, maxval=1.0),
    }
    is_terminated_seq = jax.random.uniform(jax.random.PRNGKey(42), (T, B)) > 0.6

    rolled = bicycle_model_rollout(state, actions_seq, is_terminated_seq, delta_t)
    jax.block_until_ready(rolled)

    ref = {k: v for k, v in state.items()}
    for t in range(T):
        a_t = {k: v[t] for k, v in actions_seq.items()}
        ref = _reference(ref, a_t, is_terminated_seq[t], delta_t)
    for k in ('pos', 'yaw', 'vel'):
        np.testing.assert_allclose(np.asarray(rolled[k]), np.asarray(ref[k]),
                                   rtol=1e-4, atol=1e-4)

    print("KERNEL_OK")
</pallas_src>

<mosaic_0001>
module attributes {stable_mosaic.version = 11 : i64} {
  func.func @_step_kernel(%arg0: i32, %arg1: memref<1xf32, #tpu.memory_space<smem>>, %arg2: memref<5x8x128xf32, #tpu.memory_space<vmem>>, %arg3: memref<3x8x128xf32, #tpu.memory_space<vmem>>, %arg4: memref<5x8x128xf32, #tpu.memory_space<vmem>>) attributes {dimension_semantics = [#tpu.dimension_semantics<parallel>], iteration_bounds = array<i64: 1>, scalar_prefetch = 0 : i64, scratch_operands = 0 : i64, tpu.core_type = #tpu.core_type<tc>, window_params = [{transform_indices = @transform_0, window_bounds = array<i64: 1>}, {transform_indices = @transform_1, window_bounds = array<i64: 5, 8, 128>}, {transform_indices = @transform_2, window_bounds = array<i64: 3, 8, 128>}, {transform_indices = @transform_3, window_bounds = array<i64: 5, 8, 128>}]} {
    %c0 = arith.constant 0 : index
    %0 = memref.load %arg1[%c0] : memref<1xf32, #tpu.memory_space<smem>>
    %c0_0 = arith.constant 0 : index
    %c0_1 = arith.constant 0 : index
    %c0_2 = arith.constant 0 : index
    %1 = vector.load %arg2[%c0_0, %c0_1, %c0_2] : memref<5x8x128xf32, #tpu.memory_space<vmem>>, vector<1x8x128xf32>
    %2 = vector.shape_cast %1 : vector<1x8x128xf32> to vector<8x128xf32>
    %c1 = arith.constant 1 : index
    %c0_3 = arith.constant 0 : index
    %c0_4 = arith.constant 0 : index
    %3 = vector.load %arg2[%c1, %c0_3, %c0_4] : memref<5x8x128xf32, #tpu.memory_space<vmem>>, vector<1x8x128xf32>
    %4 = vector.shape_cast %3 : vector<1x8x128xf32> to vector<8x128xf32>
    %c2 = arith.constant 2 : index
    %c0_5 = arith.constant 0 : index
    %c0_6 = arith.constant 0 : index
    %5 = vector.load %arg2[%c2, %c0_5, %c0_6] : memref<5x8x128xf32, #tpu.memory_space<vmem>>, vector<1x8x128xf32>
    %6 = vector.shape_cast %5 : vector<1x8x128xf32> to vector<8x128xf32>
    %c3 = arith.constant 3 : index
    %c0_7 = arith.constant 0 : index
    %c0_8 = arith.constant 0 : index
    %7 = vector.load %arg2[%c3, %c0_7, %c0_8] : memref<5x8x128xf32, #tpu.memory_space<vmem>>, vector<1x8x128xf32>
    %8 = vector.shape_cast %7 : vector<1x8x128xf32> to vector<8x128xf32>
    %c4 = arith.constant 4 : index
    %c0_9 = arith.constant 0 : index
    %c0_10 = arith.constant 0 : index
    %9 = vector.load %arg2[%c4, %c0_9, %c0_10] : memref<5x8x128xf32, #tpu.memory_space<vmem>>, vector<1x8x128xf32>
    %10 = vector.shape_cast %9 : vector<1x8x128xf32> to vector<8x128xf32>
    %c0_11 = arith.constant 0 : index
    %c0_12 = arith.constant 0 : index
    %c0_13 = arith.constant 0 : index
    %11 = vector.load %arg3[%c0_11, %c0_12, %c0_13] : memref<3x8x128xf32, #tpu.memory_space<vmem>>, vector<1x8x128xf32>
    %12 = vector.shape_cast %11 : vector<1x8x128xf32> to vector<8x128xf32>
    %c1_14 = arith.constant 1 : index
    %c0_15 = arith.constant 0 : index
    %c0_16 = arith.constant 0 : index
    %13 = vector.load %arg3[%c1_14, %c0_15, %c0_16] : memref<3x8x128xf32, #tpu.memory_space<vmem>>, vector<1x8x128xf32>
    %14 = vector.shape_cast %13 : vector<1x8x128xf32> to vector<8x128xf32>
    %c2_17 = arith.constant 2 : index
    %c0_18 = arith.constant 0 : index
    %c0_19 = arith.constant 0 : index
    %15 = vector.load %arg3[%c2_17, %c0_18, %c0_19] : memref<3x8x128xf32, #tpu.memory_space<vmem>>, vector<1x8x128xf32>
    %16 = vector.shape_cast %15 : vector<1x8x128xf32> to vector<8x128xf32>
    %cst = arith.constant 0.368483365 : f32
    %17 = vector.broadcast %cst : f32 to vector<8x128xf32>
    %18 = arith.mulf %17, %14 : vector<8x128xf32>
    %19 = arith.mulf %18, %18 : vector<8x128xf32>
    %cst_20 = arith.constant -1.98412701E-4 : f32
    %20 = vector.broadcast %cst_20 : f32 to vector<8x128xf32>
    %21 = arith.mulf %19, %20 : vector<8x128xf32>
    %cst_21 = arith.constant 0.00833333377 : f32
    %22 = vector.broadcast %cst_21 : f32 to vector<8x128xf32>
    %23 = arith.addf %22, %21 : vector<8x128xf32>
    %24 = arith.mulf %19, %23 : vector<8x128xf32>
    %cst_22 = arith.constant -0.166666672 : f32
    %25 = vector.broadcast %cst_22 : f32 to vector<8x128xf32>
    %26 = arith.addf %25, %24 : vector<8x128xf32>
    %27 = arith.mulf %19, %26 : vector<8x128xf32>
    %cst_23 = arith.constant 1.000000e+00 : f32
    %28 = vector.broadcast %cst_23 : f32 to vector<8x128xf32>
    %29 = arith.addf %28, %27 : vector<8x128xf32>
    %30 = arith.mulf %18, %29 : vector<8x128xf32>
    %cst_24 = arith.constant -0.00138888892 : f32
    %31 = vector.broadcast %cst_24 : f32 to vector<8x128xf32>
    %32 = arith.mulf %19, %31 : vector<8x128xf32>
    %cst_25 = arith.constant 0.0416666679 : f32
    %33 = vector.broadcast %cst_25 : f32 to vector<8x128xf32>
    %34 = arith.addf %33, %32 : vector<8x128xf32>
    %35 = arith.mulf %19, %34 : vector<8x128xf32>
    %cst_26 = arith.constant -5.000000e-01 : f32
    %36 = vector.broadcast %cst_26 : f32 to vector<8x128xf32>
    %37 = arith.addf %36, %35 : vector<8x128xf32>
    %38 = arith.mulf %19, %37 : vector<8x128xf32>
    %cst_27 = arith.constant 1.000000e+00 : f32
    %39 = vector.broadcast %cst_27 : f32 to vector<8x128xf32>
    %40 = arith.addf %39, %38 : vector<8x128xf32>
    %cst_28 = arith.constant 1.06839871 : f32
    %41 = vector.broadcast %cst_28 : f32 to vector<8x128xf32>
    %42 = arith.mulf %41, %30 : vector<8x128xf32>
    %43 = arith.mulf %40, %40 : vector<8x128xf32>
    %44 = arith.mulf %42, %42 : vector<8x128xf32>
    %45 = arith.addf %43, %44 : vector<8x128xf32>
    %46 = math.rsqrt %45 : vector<8x128xf32>
    %47 = arith.mulf %42, %46 : vector<8x128xf32>
    %48 = arith.mulf %40, %46 : vector<8x128xf32>
    %49 = arith.mulf %8, %8 : vector<8x128xf32>
    %50 = arith.mulf %10, %10 : vector<8x128xf32>
    %51 = arith.addf %49, %50 : vector<8x128xf32>
    %52 = math.sqrt %51 : vector<8x128xf32>
    %53 = math.cos %6 : vector<8x128xf32>
    %54 = math.sin %6 : vector<8x128xf32>
    %55 = arith.mulf %53, %48 : vector<8x128xf32>
    %56 = arith.mulf %54, %47 : vector<8x128xf32>
    %57 = arith.subf %55, %56 : vector<8x128xf32>
    %58 = arith.mulf %54, %48 : vector<8x128xf32>
    %59 = arith.mulf %53, %47 : vector<8x128xf32>
    %60 = arith.addf %58, %59 : vector<8x128xf32>
    %61 = vector.broadcast %0 : f32 to vector<8x128xf32>
    %62 = arith.mulf %61, %16 : vector<8x128xf32>
    %63 = arith.mulf %52, %62 : vector<8x128xf32>
    %64 = arith.mulf %63, %57 : vector<8x128xf32>
    %65 = arith.addf %2, %64 : vector<8x128xf32>
    %66 = arith.mulf %63, %60 : vector<8x128xf32>
    %67 = arith.addf %4, %66 : vector<8x128xf32>
    %68 = arith.mulf %63, %47 : vector<8x128xf32>
    %cst_29 = arith.constant 0.705304443 : f32
    %69 = vector.broadcast %cst_29 : f32 to vector<8x128xf32>
    %70 = arith.mulf %68, %69 : vector<8x128xf32>
    %71 = arith.addf %6, %70 : vector<8x128xf32>
    %72 = vector.broadcast %0 : f32 to vector<8x128xf32>
    %73 = arith.mulf %12, %72 : vector<8x128xf32>
    %74 = arith.addf %52, %73 : vector<8x128xf32>
    %cst_30 = arith.constant 7.000000e+00 : f32
    %75 = vector.broadcast %cst_30 : f32 to vector<8x128xf32>
    %76 = arith.mulf %75, %74 : vector<8x128xf32>
    %cst_31 = arith.constant 2.000000e+01 : f32
    %77 = vector.broadcast %cst_31 : f32 to vector<8x128xf32>
    %78 = arith.cmpf ogt, %76, %77 : vector<8x128xf32>
    %79 = math.exp %76 : vector<8x128xf32>
    %80 = math.log1p %79 : vector<8x128xf32>
    %cst_32 = arith.constant 0.142857149 : f32
    %81 = vector.broadcast %cst_32 : f32 to vector<8x128xf32>
    %82 = arith.mulf %80, %81 : vector<8x128xf32>
    %83 = arith.select %78, %74, %82 : vector<8x128xi1>, vector<8x128xf32>
    %84 = arith.mulf %83, %57 : vector<8x128xf32>
    %85 = arith.subf %84, %8 : vector<8x128xf32>
    %86 = arith.mulf %85, %16 : vector<8x128xf32>
    %87 = arith.addf %8, %86 : vector<8x128xf32>
    %88 = arith.mulf %83, %60 : vector<8x128xf32>
    %89 = arith.subf %88, %10 : vector<8x128xf32>
    %90 = arith.mulf %89, %16 : vector<8x128xf32>
    %91 = arith.addf %10, %90 : vector<8x128xf32>
    %c0_33 = arith.constant 0 : index
    %c0_34 = arith.constant 0 : index
    %c0_35 = arith.constant 0 : index
    %92 = vector.load %arg4[%c0_33, %c0_34, %c0_35] : memref<5x8x128xf32, #tpu.memory_space<vmem>>, vector<1x8x128xf32>
    %93 = vector.shape_cast %92 : vector<1x8x128xf32> to vector<8x128xf32>
    %94 = vector.shape_cast %65 : vector<8x128xf32> to vector<1x8x128xf32>
    tpu.vector_store %arg4[%c0_33, %c0_34, %c0_35], %94 {strides = array<i32>} : memref<5x8x128xf32, #tpu.memory_space<vmem>>, vector<1x8x128xf32>,
    %c1_36 = arith.constant 1 : index
    %c0_37 = arith.constant 0 : index
    %c0_38 = arith.constant 0 : index
    %95 = vector.load %arg4[%c1_36, %c0_37, %c0_38] : memref<5x8x128xf32, #tpu.memory_space<vmem>>, vector<1x8x128xf32>
    %96 = vector.shape_cast %95 : vector<1x8x128xf32> to vector<8x128xf32>
    %97 = vector.shape_cast %67 : vector<8x128xf32> to vector<1x8x128xf32>
    tpu.vector_store %arg4[%c1_36, %c0_37, %c0_38], %97 {strides = array<i32>} : memref<5x8x128xf32, #tpu.memory_space<vmem>>, vector<1x8x128xf32>,
    %c2_39 = arith.constant 2 : index
    %c0_40 = arith.constant 0 : index
    %c0_41 = arith.constant 0 : index
    %98 = vector.load %arg4[%c2_39, %c0_40, %c0_41] : memref<5x8x128xf32, #tpu.memory_space<vmem>>, vector<1x8x128xf32>
    %99 = vector.shape_cast %98 : vector<1x8x128xf32> to vector<8x128xf32>
    %100 = vector.shape_cast %71 : vector<8x128xf32> to vector<1x8x128xf32>
    tpu.vector_store %arg4[%c2_39, %c0_40, %c0_41], %100 {strides = array<i32>} : memref<5x8x128xf32, #tpu.memory_space<vmem>>, vector<1x8x128xf32>,
    %c3_42 = arith.constant 3 : index
    %c0_43 = arith.constant 0 : index
    %c0_44 = arith.constant 0 : index
    %101 = vector.load %arg4[%c3_42, %c0_43, %c0_44] : memref<5x8x128xf32, #tpu.memory_space<vmem>>, vector<1x8x128xf32>
    %102 = vector.shape_cast %101 : vector<1x8x128xf32> to vector<8x128xf32>
    %103 = vector.shape_cast %87 : vector<8x128xf32> to vector<1x8x128xf32>
    tpu.vector_store %arg4[%c3_42, %c0_43, %c0_44], %103 {strides = array<i32>} : memref<5x8x128xf32, #tpu.memory_space<vmem>>, vector<1x8x128xf32>,
    %c4_45 = arith.constant 4 : index
    %c0_46 = arith.constant 0 : index
    %c0_47 = arith.constant 0 : index
    %104 = vector.load %arg4[%c4_45, %c0_46, %c0_47] : memref<5x8x128xf32, #tpu.memory_space<vmem>>, vector<1x8x128xf32>
    %105 = vector.shape_cast %104 : vector<1x8x128xf32> to vector<8x128xf32>
    %106 = vector.shape_cast %91 : vector<8x128xf32> to vector<1x8x128xf32>
    tpu.vector_store %arg4[%c4_45, %c0_46, %c0_47], %106 {strides = array<i32>} : memref<5x8x128xf32, #tpu.memory_space<vmem>>, vector<1x8x128xf32>,
    return
  }
  func.func @transform_0(%arg0: i32) -> i32 {
    %c0_i32 = arith.constant 0 : i32
    %c0_i32_0 = arith.constant 0 : i32
    return %c0_i32 : i32
  }
  func.func @transform_1(%arg0: i32) -> (i32, i32, i32) {
    %c0_i32 = arith.constant 0 : i32
    %c0_i32_0 = arith.constant 0 : i32
    %c0_i32_1 = arith.constant 0 : i32
    return %c0_i32, %c0_i32_0, %arg0 : i32, i32, i32
  }
  func.func @transform_2(%arg0: i32) -> (i32, i32, i32) {
    %c0_i32 = arith.constant 0 : i32
    %c0_i32_0 = arith.constant 0 : i32
    %c0_i32_1 = arith.constant 0 : i32
    return %c0_i32, %c0_i32_0, %arg0 : i32, i32, i32
  }
  func.func @transform_3(%arg0: i32) -> (i32, i32, i32) {
    %c0_i32 = arith.constant 0 : i32
    %c0_i32_0 = arith.constant 0 : i32
    %c0_i32_1 = arith.constant 0 : i32
    return %c0_i32, %c0_i32_0, %arg0 : i32, i32, i32
  }
}

</mosaic_0001>

<bundles_post_ra>
// kernel: tpu_custom_call.1
= control target key start
LH: loop header
LB: loop body
LE: loop exit
PB: predicated region body
PF: predicated region fallthrough
CT: control target
= control target key end

     0   :  { %9 = vsyncpa [#allocation4], 0  ;;  %s590_s0 = inlined_call_operand.<no memory space> [shape: f32[1], index: 0, kind: input, shape index: {}]   ;;  %s591_s1 = inlined_call_operand.hbm [shape: f32[5,8,128], index: 1, kind: input, shape index: {}, may-alias: {1,3}]   ;;  %s592_s2 = inlined_call_operand.vmem [shape: f32[3,8,128], index: 2, kind: input, shape index: {}]   ;;  %s593_s3 = inlined_call_operand.hbm [shape: f32[5,8,128], index: 3, kind: output, shape index: {}, may-alias: {1,3}]  }
   0x1   :  { %10 = vsyncpa [#allocation5], 0  ;;  %s435_s12 = smov [#allocation3]   ;;  %s387_s16 = scalar_lea.hbm %s591_s1, 640 }
   0x2   :  { %s18_s13 = sshll.u32 %s435_s12, 4  ;;  %p388_p0 = scmp.ne.s32.totalorder %s591_s1, %s387_s16  ;;  %s19_s13 = int_to_ptr.vmem [resolvable:$true] %s18_s13 }
   0x3   :  { %p391_p1 = scmp.lt.u32.totalorder %s387_s16, %s591_s1 }
   0x5   :  { %p393_p2 = pnand %p391_p1, %p388_p0 }
   0x7   :  { %396 = shalt.err (!%p393_p2)
}
   0x8   :  { %s397_s21 = scalar_lea.vmem %s19_s13, 640  ;;  %p402_p4 = scmp.lt.s32.totalorder %s19_s13, %s19_s13 }
   0x9   :  { %p398_p3 = scmp.ne.s32.totalorder %s19_s13, %s397_s21  ;;  %p403_p5 = scmp.lt.s32.totalorder %s397_s21, %s397_s21 }
   0xb   :  { %p404_p6 = por %p403_p5, %p402_p4 }
   0xd   :  { %p405_p7 = pnand %p404_p6, %p398_p3 }
   0xf   :  { %408 = shalt.err (!%p405_p7)
}
  0x10   :  { %s436_s22 = smov 128   ;;  %s437_s23 = smov 8  }
  0x11   :  { %24 = dma.hbm_to_vmem [thread:$0]  %s591_s1, 640, %s19_s13, [#allocation4], %s436_s22, %s436_s22, %s437_s23  }
  0x12   :  { %431 = dma.done.wait [#allocation4], 640  }
  0x13   :  { %432 = vsyncadd [#allocation4], 4294966656  ;;  %v480_v0 = vld [vmem:[#allocation3 + $0x10] sm:$0xff]  ;;  %v482_v1 = vld [vmem:[#allocation3 + $0x18] sm:$0xff]  ;;  %v438_v29 = vmov 683565275  }
  0x14   :  { %v484_v2 = vld [vmem:[#allocation3 + $0x20] sm:$0xff]  ;;  %v351_v3 = vld [vmem:[%s592_s2 + $0x8] sm:$0xff]  ;;  %v80_v5 = vand.u32 2139095040, %v480_v0  ;;  %v67_v7 = vmul.f32 %v482_v1, %v482_v1  ;;  %v77_v12 = vand.u32 2147483647, %v480_v0  ;;  %vm79_vm9 = vcmp.lt.s32.totalorder %v480_v0, 0 }
  0x15   :  { %v45_v4 = vmul.f32 0.36848336, %v351_v3  ;;  %v68_v8 = vmul.f32 %v484_v2, %v484_v2  ;;  %v439_v31 = vmov 2475754826   ;;  %v440_v35 = vmov 2131351028  }
  0x16   :  { %v81_v9 = vshrl.u32 %v80_v5, 23  ;;  %v84_v20 = vand.u32 8388607, %v77_v12  ;;  %v441_v37 = vmov 2102212464  }
  0x17   :  { %v46_v6 = vmul.f32 %v45_v4, %v45_v4  ;;  %v495_v16 = vadd.f32 %v68_v8, %v67_v7  ;;  %v442_v42 = vmov 920167782   ;;  %v443_v50 = vmov 1326507024  }
  0x18   :  { %v353_v13 = vadd.s32 4294967169, %v81_v9  ;;  %v85_v27 = vor.u32 8388608, %v84_v20  ;;  %v521_v20 = vld [vmem:[%s592_s2 + $0x10] sm:$0xff]  ;;  %vm78_vm10 = vcmp.le.f32.partialorder %v77_v12, 0.7853982 }
  0x19   :  { %v47_v10 = vmul.f32 -0.0001984127, %v46_v6  ;;  %v54_v11 = vmul.f32 -0.0013888889, %v46_v6  ;;  %375 = vrsqrt.f32 %v495_v16  ;;  %vm72_vm5 = vcmp.eq.f32.partialorder %v495_v16, inf }
  0x1a   :  { %v87_v17 = vadd.s32 1, %v353_v13  ;;  %v125_v52 = vshll.u32 %v85_v27, 8  ;;  %vm74_vm6 = vcmp.eq.f32.partialorder %v495_v16, 0.0 }
  0x1b   :  { %v48_v14 = vadd.f32 0.008333334, %v47_v10  ;;  %v55_v15 = vadd.f32 0.041666668, %v54_v11 }
  0x1c   :  { %vm88_vm0 = vcmp.gt.s32.totalorder %v87_v17, 0 }
  0x1d   :  { %v49_v18 = vmul.f32 %v48_v14, %v46_v6  ;;  %v56_v19 = vmul.f32 %v55_v15, %v46_v6  ;;  %v89_v23 = vsel %vm88_vm0, %v87_v17, 0 }
  0x1e   :  { %v91_v24 = vand.u32 31, %v89_v23  ;;  %v90_v39 = vshrl.u32 %v89_v23, 5 }
  0x1f   :  { %v50_v21 = vadd.f32 -0.16666667, %v49_v18  ;;  %v57_v22 = vadd.f32 -0.5, %v56_v19  ;;  %v40_v19 = vld [vmem:[%s592_s2] sm:$0xff] }
  0x20   :  { %v92_v28 = vsub.s32 32, %v91_v24  ;;  %v94_v30 = vshll.u32 %v438_v29, %v91_v24  ;;  %v97_v32 = vshll.u32 %v439_v31, %v91_v24  ;;  %v100_v36 = vshll.u32 %v440_v35, %v91_v24 }
  0x21   :  { %v51_v25 = vmul.f32 %v50_v21, %v46_v6  ;;  %v58_v26 = vmul.f32 %v57_v22, %v46_v6  ;;  %v103_v38 = vshll.u32 %v441_v37, %v91_v24  ;;  %v106_v43 = vshll.u32 %v442_v42, %v91_v24 }
  0x22   :  { %v95_v40 = vshrl.u32 %v439_v31, %v92_v28  ;;  %v98_v41 = vshrl.u32 %v440_v35, %v92_v28  ;;  %v93_v45 = vshrl.u32 %v438_v29, %v92_v28  ;;  %v101_v46 = vshrl.u32 %v441_v37, %v92_v28 }
  0x23   :  { %v52_v33 = vadd.f32 1.0, %v51_v25  ;;  %v500_v34 = vadd.f32 1.0, %v58_v26  ;;  %v104_v47 = vshrl.u32 %v442_v42, %v92_v28  ;;  %v107_v51 = vshrl.u32 %v443_v50, %v92_v28  ;;  %v376_v58 = vpop.eup %375 }
  0x24   :  { %v96_v48 = vor.u32 %v95_v40, %v94_v30  ;;  %v99_v49 = vor.u32 %v98_v41, %v97_v32  ;;  %v102_v55 = vor.u32 %v101_v46, %v100_v36  ;;  %vm109_vm1 = vcmp.lt.s32.totalorder %v90_v39, 1 }
  0x25   :  { %v53_v44 = vmul.f32 %v52_v33, %v45_v4  ;;  %v61_v54 = vmul.f32 %v500_v34, %v500_v34  ;;  %v105_v56 = vor.u32 %v104_v47, %v103_v38  ;;  %v108_v57 = vor.u32 %v107_v51, %v106_v43 }
  0x26   :  { %vm110_vm2 = vcmp.lt.s32.totalorder %v90_v39, 2  ;;  %vm111_vm3 = vcmp.lt.s32.totalorder %v90_v39, 3  ;;  %vm112_vm4 = vcmp.lt.s32.totalorder %v90_v39, 4  ;;  %v113_v60 = vsel %vm109_vm1, %v93_v45, %v96_v48 }
  0x27   :  { %v60_v53 = vmul.f32 1.0683987, %v53_v44  ;;  %v117_v61 = vsel %vm109_vm1, %v96_v48, %v99_v49  ;;  %v114_v62 = vsel %vm112_vm4, %v102_v55, 2102212464  ;;  %v118_v63 = vsel %vm112_vm4, %v105_v56, 920167782 }
  0x28   :  { %v121_v3 = vsel %vm109_vm1, %v99_v49, %v102_v55  ;;  %v122_v4 = vsel %vm112_vm4, %v108_v57, 1326507024  ;;  %v115_v6 = vsel %vm111_vm3, %v99_v49, %v114_v62  ;;  %v119_v7 = vsel %vm111_vm3, %v102_v55, %v118_v63 }
  0x29   :  { %v62_v59 = vmul.f32 %v60_v53, %v60_v53  ;;  %v123_v8 = vsel %vm111_vm3, %v105_v56, %v122_v4  ;;  %v71_v9 = vmul.f32 %v376_v58, %v495_v16  ;;  %v120_v10 = vsel %vm110_vm2, %v117_v61, %v119_v7 }
  0x2a   :  { %v124_v11 = vsel %vm110_vm2, %v121_v3, %v123_v8  ;;  %v116_v15 = vsel %vm110_vm2, %v113_v60, %v115_v6  ;;  %v512_v17 = vmul.u32.u64.low %v125_v52, %v120_v10  ;;  %v513_v18 = vmul.u32.u64.high %v125_v52, %v120_v10, %v512_v17 }
  0x2b   :  { %v63_v5 = vadd.f32 %v62_v59, %v61_v54  ;;  %v508_v13 = vmul.u32.u64.low %v125_v52, %v124_v11  ;;  %v509_v14 = vmul.u32.u64.high %v125_v52, %v124_v11, %v508_v13  ;;  %v75_v21 = vand.u32 2147483648, %v495_v16 }
  0x2c   :  { %v290_v22 = vstv %s590_s0  ;;  %v73_v23 = vsel %vm72_vm5, %v495_v16, %v71_v9  ;;  %v132_v24 = vmul.u32 %v125_v52, %v116_v15  ;;  %v135_v25 = vadd.s32 1, %v513_v18  ;;  %s444_s0 = smov [#allocation6]  }
  0x2d   :  { %377 = vrsqrt.f32 %v63_v5  ;;  %vm134_vm7 = vc.u32 %v509_v14, %v512_v17  ;;  %v291_v26 = vmul.f32 %v521_v20, %v290_v22  ;;  %v300_v27 = vmul.f32 %v290_v22, %v40_v19  ;;  %s339_s2 = sshll.u32 %s444_s0, 4  ;;  %s340_s2 = int_to_ptr.vmem [resolvable:$true] %s339_s2 }
  0x2e   :  { %v76_v28 = vsel %vm74_vm6, %v75_v21, %v73_v23  ;;  %v136_v29 = vsel %vm134_vm7, %v135_v25, %v513_v18  ;;  %v133_v48 = vadd.s32 %v512_v17, %v509_v14  ;;  %vm169_vm2 = vweird.f32 %v480_v0  ;;  %s409_s6 = scalar_lea.vmem %s340_s2, 640  ;;  %p414_p9 = scmp.lt.s32.totalorder %s340_s2, %s340_s2 }
  0x2f   :  { %v137_v30 = vadd.s32 %v136_v29, %v132_v24  ;;  %v533_v31 = vmul.f32 %v291_v26, %v76_v28  ;;  %v535_v32 = vadd.f32 %v300_v27, %v76_v28  ;;  %p410_p8 = scmp.ne.s32.totalorder %s340_s2, %s409_s6  ;;  %p415_p10 = scmp.lt.s32.totalorder %s409_s6, %s409_s6 }
  0x31   :  { %v138_v35 = vadd.s32 536870912, %v137_v30  ;;  %v543_v37 = vmul.f32 7.0, %v535_v32  ;;  %p416_p11 = por %p415_p10, %p414_p9 }
  0x33   :  { %v139_v36 = vshrl.u32 %v138_v35, 30  ;;  %v304_v42 = vmul.f32 1.442695, %v543_v37  ;;  %vm303_vm3 = vcmp.gt.f32.partialorder %v543_v37, 20.0  ;;  %p417_p12 = pnand %p416_p11, %p410_p8 }
  0x35   :  { %v140_v39 = vshll.u32 %v139_v36, 30  ;;  %379 = vpow2.f32 %v304_v42  ;;  %v163_v62 = vsub.s32 4, %v139_v36 }
  0x37   :  { %v537_v33 = vpop.eup %377  ;;  %v141_v41 = vsub.s32 %v137_v30, %v140_v39  ;;  %v164_v4 = vsel %vm79_vm9, %v163_v62, %v139_v36 }
  0x38   :  { %v540_v16 = vmul.f32 %v537_v33, %v60_v53  ;;  %v166_v7 = vsel %vm78_vm10, 0, %v164_v4  ;;  %v66_v25 = vmul.f32 %v537_v33, %v500_v34 }
  0x39   :  { %v143_v44 = vsub.s32 0, %v141_v41  ;;  %v273_v9 = vadd.s32 3, %v166_v7  ;;  %v170_v14 = vand.u32 3, %v166_v7 }
  0x3a   :  { %v297_v38 = vmul.f32 %v533_v31, %v540_v16 }
  0x3b   :  { %v354_v45 = vmin.u32 %v143_v44, %v141_v41  ;;  %v274_v15 = vand.u32 3, %v273_v9  ;;  %vm175_vm12 = vcmp.eq.s32.totalorder %v170_v14, 2  ;;  %vm172_vm14 = vcmp.eq.s32.totalorder %v170_v14, 0  ;;  %v31_v44 = vld [vmem:[#allocation3] sm:$0xff] }
  0x3c   :  { %v298_v40 = vmul.f32 0.70530444, %v297_v38  ;;  %vm171_vm0 = vcmp.lt.s32.totalorder %v170_v14, 2 }
  0x3d   :  { %v145_v46 = vclz %v354_v45  ;;  %vm279_vm13 = vcmp.eq.s32.totalorder %v274_v15, 2  ;;  %vm276_vm15 = vcmp.eq.s32.totalorder %v274_v15, 0  ;;  %vm275_vm1 = vcmp.lt.s32.totalorder %v274_v15, 2  ;;  %v33_v45 = vld [vmem:[#allocation3 + $0x8] sm:$0xff] }
  0x3e   :  { %v299_v43 = vadd.f32 %v298_v40, %v480_v0 }
  0x3f   :  { %v355_v47 = vadd.s32 4294967294, %v145_v46  ;;  %v380_v55 = vpop.eup %379 }
  0x40   :  { %329 = vst [vmem:[#allocation6 + $0x10] sm:$0xff] %v299_v43  ;;  %v306_v60 = vadd.f32 1.0, %v380_v55  ;;  %v309_v8 = vmul.f32 -0.5, %v380_v55  ;;  %v312_v13 = vand.u32 2147483647, %v380_v55 }
  0x41   :  { %vm356_vm8 = vcmp.lt.s32.totalorder %v355_v47, 0 }
  0x42   :  { %v148_v49 = vsel %vm356_vm8, 0, %v355_v47  ;;  %381 = vlog2.f32 %v306_v60  ;;  %v310_v10 = vadd.f32 1.0, %v309_v8  ;;  %vm554_vm11 = vcmp.lt.f32.partialorder %v312_v13, 0.0004427343 }
  0x43   :  { %v149_v50 = vsub.s32 32, %v148_v49  ;;  %v150_v51 = vshll.u32 %v141_v41, %v148_v49  ;;  %v153_v52 = vsub.s32 4294967266, %v148_v49 }
  0x44   :  { %v311_v18 = vmul.f32 %v380_v55, %v310_v10 }
  0x45   :  { %v151_v53 = vshrl.u32 %v133_v48, %v149_v50  ;;  %v154_v54 = vadd.s32 127, %v153_v52 }
  0x47   :  { %v152_v56 = vor.u32 %v151_v53, %v150_v51  ;;  %v155_v57 = vshll.u32 %v154_v54, 23 }
  0x49   :  { %v156_v58 = vor.u32 4788187, %v155_v57  ;;  %v159_v59 = vcvt.s32.f32 %v152_v56 }
  0x4b   :  { %v157_v61 = vand.u32 2147483647, %v156_v58 }
  0x4c   :  { %v382_v11 = vpop.eup %381 }
  0x4d   :  { %v160_v63 = vmul.f32 %v159_v59, %v157_v61  ;;  %v308_v17 = vmul.f32 0.6931472, %v382_v11 }
  0x4f   :  { %v161_v3 = vxor.u32 2147483648, %v160_v63  ;;  %v314_v23 = vsel %vm554_vm11, %v311_v18, %v308_v17 }
  0x50   :  { %v315_v30 = vmul.f32 0.14285715, %v314_v23 }
  0x51   :  { %v162_v5 = vsel %vm79_vm9, %v161_v3, %v160_v63 }
  0x52   :  { %v165_v6 = vsel %vm78_vm10, %v480_v0, %v162_v5  ;;  %v316_v34 = vsel %vm303_vm3, %v535_v32, %v315_v30 }
  0x53   :  { %383 = vcosq.f32 %v165_v6 }
  0x54   :  { %385 = vsinq.f32 %v165_v6 }
  0x5d   :  { %v384_v12 = vpop.eup %383 }
  0x5e   :  { %v386_v21 = vpop.eup %385  ;;  %v176_v22 = vxor.u32 2147483648, %v384_v12 }
  0x5f   :  { %v173_v24 = vxor.u32 2147483648, %v386_v21 }
  0x60   :  { %v177_v26 = vsel %vm175_vm12, %v176_v22, %v386_v21  ;;  %v281_v27 = vsel %vm279_vm13, %v176_v22, %v386_v21 }
  0x61   :  { %v174_v28 = vsel %vm172_vm14, %v384_v12, %v173_v24  ;;  %v278_v29 = vsel %vm276_vm15, %v384_v12, %v173_v24 }
  0x62   :  { %v178_v35 = vsel %vm171_vm0, %v174_v28, %v177_v26  ;;  %v282_v36 = vsel %vm275_vm1, %v278_v29, %v281_v27 }
  0x63   :  { %v179_v38 = vsel %vm169_vm2, nan, %v178_v35  ;;  %v283_v39 = vsel %vm169_vm2, nan, %v282_v36 }
  0x64   :  { %v284_v40 = vmul.f32 %v179_v38, %v66_v25  ;;  %v285_v41 = vmul.f32 %v283_v39, %v540_v16  ;;  %v287_v42 = vmul.f32 %v283_v39, %v66_v25  ;;  %v288_v43 = vmul.f32 %v179_v38, %v540_v16 }
  0x66   :  { %v286_v0 = vsub.f32 %v284_v40, %v285_v41  ;;  %v289_v33 = vadd.f32 %v288_v43, %v287_v42 }
  0x68   :  { %v293_v46 = vmul.f32 %v533_v31, %v286_v0  ;;  %v295_v47 = vmul.f32 %v533_v31, %v289_v33  ;;  %v317_v48 = vmul.f32 %v316_v34, %v286_v0  ;;  %v321_v37 = vmul.f32 %v316_v34, %v289_v33 }
  0x6a   :  { %v294_v49 = vadd.f32 %v293_v46, %v31_v44  ;;  %v296_v50 = vadd.f32 %v295_v47, %v33_v45  ;;  %v318_v51 = vsub.f32 %v317_v48, %v482_v1  ;;  %v322_v52 = vsub.f32 %v321_v37, %v484_v2 }
  0x6c   :  { %325 = vst [vmem:[#allocation6] sm:$0xff] %v294_v49  ;;  %327 = vst [vmem:[#allocation6 + $0x8] sm:$0xff] %v296_v50  ;;  %v319_v32 = vmul.f32 %v521_v20, %v318_v51  ;;  %v323_v16 = vmul.f32 %v521_v20, %v322_v52 }
  0x6e   :  { %v320_v53 = vadd.f32 %v319_v32, %v482_v1  ;;  %v324_v31 = vadd.f32 %v323_v16, %v484_v2 }
  0x70   :  { %331 = vst [vmem:[#allocation6 + $0x18] sm:$0xff] %v320_v53  ;;  %333 = vst [vmem:[#allocation6 + $0x20] sm:$0xff] %v324_v31 }
  0x71   :  { %420 = shalt.err (!%p417_p12)
}
  0x72   :  { %s421_s9 = scalar_lea.hbm %s593_s3, 640 }
  0x73   :  { %p422_p13 = scmp.ne.s32.totalorder %s593_s3, %s421_s9  ;;  %p425_p0 = scmp.lt.u32.totalorder %s421_s9, %s593_s3 }
  0x75   :  { %p427_p1 = pnand %p425_p0, %p422_p13 }
  0x77   :  { %430 = shalt.err (!%p427_p1)
}
  0x78   :  { %345 = dma.vmem_to_hbm [thread:$0]  %s340_s2, 640, %s593_s3, [#allocation5], %s436_s22, %s436_s22, %s437_s23  }
  0x79   :  { %433 = dma.done.wait [#allocation5], 640  }
  0x7a   :  { %434 = vsyncadd [#allocation5], 4294966656 }
  0x7b   :  { %349 = vsyncpa [#allocation4], 1 }
  0x7c   :  { %350 = vsyncpa [#allocation5], 1 }

</bundles_post_ra>
